<compile_context>
chip_gen: v6e
topology: v6e:2x2x1
jax: 0.10.0
libtpu: 0.0.40
codegen_flags: <defaults>
</compile_context>

<pallas_src>
import functools

import jax
import jax.numpy as jnp
from jax import lax
from jax.experimental import pallas as pl
from jax.experimental.pallas import tpu as pltpu

_LANE = 128


def _pw_conv_bn_kernel(x_ref, w_ref, b_ref, o_ref, *, compute_dtype):
    # x_ref: (1, 1, Kg, tM)   activations in stored dtype, spatial on lanes
    # w_ref: (1, Mg, Kg)      BN-folded block-diagonal weights (resident)
    # b_ref: (1, Mg, 1)       folded conv-bias + BN shift, f32
    # o_ref: (1, 1, Mg, tM)   lane-dense output tile
    x = x_ref[0, 0]
    if x.dtype != compute_dtype:
        x = x.astype(compute_dtype)          # in-kernel cast: free filler in a DMA-bound kernel
    y = jnp.dot(w_ref[0], x, preferred_element_type=jnp.float32)   # (Mg, tM) f32
    o_ref[0, 0] = (y + b_ref[0]).astype(o_ref.dtype)


def _vmem_budget_bytes():
    """Generation-aware VMEM budget with headroom (v7x: 64 MiB/TC -> ~48 MiB)."""
    cap = 0
    try:
        info = pltpu.get_tpu_info()
        cap = int(getattr(info, "vmem_capacity_bytes", 0) or 0)
    except Exception:
        cap = 0
    if cap <= 0:
        cap = 64 * 2**20              # conservative fallback: v7x per-TensorCore VMEM
    return min(3 * cap // 4, 80 * 2**20)


def _default_mxu_k():
    try:
        info = pltpu.get_tpu_info()
        for attr in ("mxu_contracting_size", "mxu_size", "mxu_column_count"):
            v = getattr(info, attr, None)
            if isinstance(v, int) and v > 0:
                return int(v)
    except Exception:
        pass
    return 256   # v6e / v7x MXU width; pass mxu_k=128 explicitly on v5e


def _choose_group_fold(groups, cin_g, cout_g, mxu_k):
    """Largest divisor of `groups` keeping the folded K near the MXU width."""
    g_sub = 1
    for d in range(1, groups + 1):
        if groups % d:
            continue
        if d * cin_g <= mxu_k and d * cout_g <= 4 * mxu_k:
            g_sub = d
    return g_sub


def _choose_tile_lanes(n_lanes, kg, mg, x_bytes, o_bytes, w_block_bytes,
                       gb, n_batch, budget, target_in_bytes=2 << 20):
    """Pick the spatial tile (in 128-lane units) from the VMEM budget."""
    in_per_lane = kg * x_bytes * _LANE       # bytes per 128-lane column of x
    out_per_lane = mg * o_bytes * _LANE
    fixed = 2 * (w_block_bytes + mg * 4)     # double-buffered weight + bias blocks
    avail = max(budget - fixed, 2 * (in_per_lane + out_per_lane))
    cap_lanes = max(1, int(avail // (2 * (in_per_lane + out_per_lane))))
    tgt_lanes = max(1, int(target_in_bytes // in_per_lane))   # ~2 MiB input block
    lanes = max(1, min(cap_lanes, tgt_lanes, n_lanes))
    # Prefer a tile that divides the padded spatial extent -> no masked remainder store.
    best_div = 1
    for d in range(lanes, 0, -1):
        if n_lanes % d == 0:
            best_div = d
            break
    if 2 * best_div >= lanes:
        lanes = best_div
    # Keep enough grid steps for v7x megacore sharding + pipeline overlap.
    while gb * n_batch * pl.cdiv(n_lanes, lanes) < 8 and lanes > 1:
        lanes = max(1, lanes // 2)
    return lanes


def _block_spec(shape, index_map, n_buffers=2):
    if n_buffers != 2:
        try:
            return pl.BlockSpec(shape, index_map, pipeline_mode=pl.Buffered(n_buffers))
        except Exception:   # older jax without pipeline_mode / Buffered
            pass
    return pl.BlockSpec(shape, index_map)


def pointwise_conv2d(x, weight, conv_bias, bn_gamma, bn_beta, bn_mean, bn_var,
                     *, groups, stride=1, padding=0, eps=1e-5,
                     compute_dtype=None, out_dtype=None, mxu_k=None):
    """Forward of PointwiseConv2d: Conv2d(1x1, groups, stride=1, pad=0) -> BatchNorm2d (eval)."""
    N, Cin, H, W = x.shape
    Cout, Cin_g_w, kh, kw = weight.shape
    assert kh == 1 and kw == 1, "pointwise conv requires kernel_size=1"
    assert stride == 1 and padding == 0, "pointwise conv uses stride=1, padding=0"
    assert Cin % groups == 0 and Cout % groups == 0
    Cin_g, Cout_g = Cin // groups, Cout // groups
    assert Cin_g_w == Cin_g
    HW = H * W
    HW_pad = ((HW + _LANE - 1) // _LANE) * _LANE

    if compute_dtype is None:
        compute_dtype = x.dtype
    compute_dtype = jnp.dtype(compute_dtype)
    if out_dtype is None:
        out_dtype = x.dtype
    out_dtype = jnp.dtype(out_dtype)
    if mxu_k is None:
        mxu_k = _default_mxu_k()

    # --- Group folding: pack G_sub consecutive groups per grid step. ---
    G_sub = _choose_group_fold(groups, Cin_g, Cout_g, mxu_k)
    GB = groups // G_sub
    Kg, Mg = G_sub * Cin_g, G_sub * Cout_g

    # --- Fold eval-mode BatchNorm into weights / bias (tiny wrapper-side math). ---
    scale = bn_gamma / jnp.sqrt(bn_var + eps)                       # (Cout,)
    if conv_bias is None:
        conv_bias = jnp.zeros((Cout,), dtype=weight.dtype)
    bias = (conv_bias - bn_mean) * scale + bn_beta                  # (Cout,)
    wg = weight.reshape(groups, Cout_g, Cin_g) * scale.reshape(groups, Cout_g, 1)
    # Block-diagonal packing: (GB, G_sub*Cout_g, G_sub*Cin_g).
    wgb = wg.reshape(GB, G_sub, Cout_g, Cin_g)
    eye = jnp.eye(G_sub, dtype=wg.dtype)
    w_bd = wgb[:, :, None, :, :] * eye[None, :, :, None, None]      # (GB,s,t,Cout_g,Cin_g)
    w_bd = w_bd.transpose(0, 1, 3, 2, 4).reshape(GB, Mg, Kg).astype(compute_dtype)
    bias_g = bias.reshape(GB, Mg, 1).astype(jnp.float32)

    # --- Activations: pure reshape (no HBM transpose); pad spatial to lane multiple. ---
    xg = x.reshape(N, GB, Kg, HW)            # stays in stored dtype (no wrapper cast pass)
    if HW_pad != HW:
        xg = jnp.pad(xg, ((0, 0), (0, 0), (0, 0), (0, HW_pad - HW)))

    # --- Spatial (lane-axis) tile, sized from a generation-aware VMEM budget. ---
    x_bytes = jnp.dtype(x.dtype).itemsize
    o_bytes = out_dtype.itemsize
    c_bytes = compute_dtype.itemsize
    w_block_bytes = Mg * Kg * c_bytes
    budget = _vmem_budget_bytes()
    lanes = _choose_tile_lanes(HW_pad // _LANE, Kg, Mg, x_bytes, o_bytes,
                               w_block_bytes, GB, N, budget)
    tM = lanes * _LANE
    m_tiles = pl.cdiv(HW_pad, tM)
    grid = (GB, N, m_tiles)                  # group-block slowest -> weights stay resident

    in_block = Kg * tM * x_bytes
    out_block = Mg * tM * o_bytes
    # Deeper input pipelining only while blocks are small and there are enough inner tiles.
    n_buf_in = 3 if (in_block < 256 * 1024 and m_tiles >= 3) else 2
    vmem_use = n_buf_in * in_block + 2 * out_block + 2 * (w_block_bytes + Mg * 4)
    vmem_limit = int(min(budget, max(2 * vmem_use, 16 * 2**20)))

    cost = pl.CostEstimate(
        flops=2 * N * GB * HW_pad * Kg * Mg,
        transcendentals=0,
        bytes_accessed=(N * GB * Kg * HW_pad * x_bytes
                        + N * GB * Mg * HW_pad * o_bytes
                        + GB * (w_block_bytes + Mg * 4)))

    kernel = functools.partial(_pw_conv_bn_kernel, compute_dtype=compute_dtype)
    out_g = pl.pallas_call(
        kernel,
        out_shape=jax.ShapeDtypeStruct((N, GB, Mg, HW_pad), out_dtype),
        grid_spec=pltpu.PrefetchScalarGridSpec(
            num_scalar_prefetch=0,
            grid=grid,
            in_specs=[
                _block_spec((1, 1, Kg, tM), lambda g, n, m: (n, g, 0, m),
                            n_buffers=n_buf_in),
                pl.BlockSpec((1, Mg, Kg), lambda g, n, m: (g, 0, 0)),
                pl.BlockSpec((1, Mg, 1), lambda g, n, m: (g, 0, 0)),
            ],
            out_specs=pl.BlockSpec((1, 1, Mg, tM), lambda g, n, m: (n, g, 0, m)),
        ),
        compiler_params=pltpu.CompilerParams(
            dimension_semantics=("parallel", "parallel", "parallel"),
            vmem_limit_bytes=vmem_limit),
        cost_estimate=cost,
    )(xg, w_bd, bias_g)

    # (N, GB, Mg, HW_pad) -> NCHW: drop padded lanes, then pure reshape.
    out = out_g[..., :HW] if HW_pad != HW else out_g
    return out.reshape(N, Cout, H, W)


def _reference(x, weight, conv_bias, bn_gamma, bn_beta, bn_mean, bn_var,
               *, groups, eps=1e-5):
    y = lax.conv_general_dilated(
        x, weight, window_strides=(1, 1), padding="VALID",
        feature_group_count=groups,
        dimension_numbers=("NCHW", "OIHW", "NCHW"))
    if conv_bias is not None:
        y = y + conv_bias[None, :, None, None]
    scale = bn_gamma / jnp.sqrt(bn_var + eps)
    return (y - bn_mean[None, :, None, None]) * scale[None, :, None, None] \
        + bn_beta[None, :, None, None]


# TODO(synk): training-mode BatchNorm (running-stat updates) is not implemented;
# eval-mode BN is folded into the conv weights, matching module inference semantics.

if __name__ == "__main__":
    key = jax.random.PRNGKey(0)

    def make_params(k, Cin, Cout, groups, with_bias=True):
        ks = jax.random.split(k, 6)
        weight = 0.1 * jax.random.normal(ks[0], (Cout, Cin // groups, 1, 1), jnp.float32)
        conv_bias = (0.1 * jax.random.normal(ks[1], (Cout,), jnp.float32)
                     if with_bias else None)
        bn_gamma = 1.0 + 0.05 * jax.random.normal(ks[2], (Cout,), jnp.float32)
        bn_beta = 0.05 * jax.random.normal(ks[3], (Cout,), jnp.float32)
        bn_mean = 0.05 * jax.random.normal(ks[4], (Cout,), jnp.float32)
        bn_var = 1.0 + 0.1 * jax.random.uniform(ks[5], (Cout,), jnp.float32)
        return weight, conv_bias, bn_gamma, bn_beta, bn_mean, bn_var

    k1, k2, kx1, kx2 = jax.random.split(key, 4)

    # --- Test 1: f32 path, groups=2, 128-aligned spatial extent, conv bias present. ---
    N, Cin, H, W, Cout, groups = 2, 8, 16, 16, 16, 2
    x = jax.random.normal(kx1, (N, Cin, H, W), jnp.float32)
    params = make_params(k1, Cin, Cout, groups, with_bias=True)
    ref = _reference(x, *params, groups=groups)
    out = jax.block_until_ready(pointwise_conv2d(x, *params, groups=groups))
    assert out.shape == (N, Cout, H, W)
    assert jnp.allclose(out, ref, atol=1e-4, rtol=1e-4)

    # --- Test 2: bf16 compute (in-kernel cast, no wrapper cast pass), groups=3 folded
    #     block-diagonally, Conv2d(bias=False), non-128-aligned spatial (12*12=144). ---
    N, Cin, H, W, Cout, groups = 2, 24, 12, 12, 24, 3
    x = jax.random.normal(kx2, (N, Cin, H, W), jnp.float32)
    params = make_params(k2, Cin, Cout, groups, with_bias=False)
    ref = _reference(x, *params, groups=groups)
    out = jax.block_until_ready(
        pointwise_conv2d(x, *params, groups=groups, compute_dtype=jnp.bfloat16))
    assert out.shape == (N, Cout, H, W)
    assert jnp.allclose(out, ref, atol=3e-2, rtol=3e-2)

    print("KERNEL_OK")
</pallas_src>

<mosaic_0001>
module attributes {stable_mosaic.version = 11 : i64} {
  func.func @_pw_conv_bn_kernel(%arg0: i32, %arg1: i32, %arg2: i32, %arg3: memref<1x1x8x128xf32, #tpu.memory_space<vmem>>, %arg4: memref<1x16x8xf32, #tpu.memory_space<vmem>>, %arg5: memref<1x16x1xf32, #tpu.memory_space<vmem>>, %arg6: memref<1x1x16x128xf32, #tpu.memory_space<vmem>>) attributes {dimension_semantics = [#tpu.dimension_semantics<parallel>, #tpu.dimension_semantics<parallel>, #tpu.dimension_semantics<parallel>], iteration_bounds = array<i64: 1, 2, 2>, scalar_prefetch = 0 : i64, scratch_operands = 0 : i64, tpu.core_type = #tpu.core_type<tc>, window_params = [{transform_indices = @transform_0, window_bounds = array<i64: 1, 1, 8, 128>}, {transform_indices = @transform_1, window_bounds = array<i64: 1, 16, 8>}, {transform_indices = @transform_2, window_bounds = array<i64: 1, 16, 1>}, {transform_indices = @transform_3, window_bounds = array<i64: 1, 1, 16, 128>}]} {
    %c0 = arith.constant 0 : index
    %c0_0 = arith.constant 0 : index
    %c0_1 = arith.constant 0 : index
    %c0_2 = arith.constant 0 : index
    %0 = vector.load %arg3[%c0, %c0_0, %c0_1, %c0_2] : memref<1x1x8x128xf32, #tpu.memory_space<vmem>>, vector<1x1x8x128xf32>
    %1 = vector.shape_cast %0 : vector<1x1x8x128xf32> to vector<8x128xf32>
    %c0_3 = arith.constant 0 : index
    %c0_4 = arith.constant 0 : index
    %c0_5 = arith.constant 0 : index
    %2 = vector.load %arg4[%c0_3, %c0_4, %c0_5] : memref<1x16x8xf32, #tpu.memory_space<vmem>>, vector<1x16x8xf32>
    %3 = vector.shape_cast %2 : vector<1x16x8xf32> to vector<16x8xf32>
    %cst = arith.constant dense<0.000000e+00> : vector<16x128xf32>
    %4 = tpu.matmul %3, %1, %cst {dimension_numbers = #tpu.dot_dimension_numbers<[1], [0], [0], [1], [0, 0, 1, 1], [], []>} : vector<16x8xf32>, vector<8x128xf32>, vector<16x128xf32> -> vector<16x128xf32>
    %c0_6 = arith.constant 0 : index
    %c0_7 = arith.constant 0 : index
    %c0_8 = arith.constant 0 : index
    %5 = vector.load %arg5[%c0_6, %c0_7, %c0_8] : memref<1x16x1xf32, #tpu.memory_space<vmem>>, vector<1x16x1xf32>
    %6 = vector.shape_cast %5 : vector<1x16x1xf32> to vector<16x1xf32>
    %7 = vector.broadcast %6 : vector<16x1xf32> to vector<16x128xf32>
    %8 = arith.addf %4, %7 : vector<16x128xf32>
    %c0_9 = arith.constant 0 : index
    %c0_10 = arith.constant 0 : index
    %c0_11 = arith.constant 0 : index
    %c0_12 = arith.constant 0 : index
    %9 = vector.load %arg6[%c0_9, %c0_10, %c0_11, %c0_12] : memref<1x1x16x128xf32, #tpu.memory_space<vmem>>, vector<1x1x16x128xf32>
    %10 = vector.shape_cast %9 : vector<1x1x16x128xf32> to vector<16x128xf32>
    %11 = vector.shape_cast %8 : vector<16x128xf32> to vector<1x1x16x128xf32>
    tpu.vector_store %arg6[%c0_9, %c0_10, %c0_11, %c0_12], %11 {strides = array<i32>} : memref<1x1x16x128xf32, #tpu.memory_space<vmem>>, vector<1x1x16x128xf32>,
    return
  }
  func.func @transform_0(%arg0: i32, %arg1: i32, %arg2: i32) -> (i32, i32, i32, i32) {
    %c0_i32 = arith.constant 0 : i32
    %c0_i32_0 = arith.constant 0 : i32
    return %arg1, %arg0, %c0_i32, %arg2 : i32, i32, i32, i32
  }
  func.func @transform_1(%arg0: i32, %arg1: i32, %arg2: i32) -> (i32, i32, i32) {
    %c0_i32 = arith.constant 0 : i32
    %c0_i32_0 = arith.constant 0 : i32
    %c0_i32_1 = arith.constant 0 : i32
    return %arg0, %c0_i32, %c0_i32_0 : i32, i32, i32
  }
  func.func @transform_2(%arg0: i32, %arg1: i32, %arg2: i32) -> (i32, i32, i32) {
    %c0_i32 = arith.constant 0 : i32
    %c0_i32_0 = arith.constant 0 : i32
    %c0_i32_1 = arith.constant 0 : i32
    return %arg0, %c0_i32, %c0_i32_0 : i32, i32, i32
  }
  func.func @transform_3(%arg0: i32, %arg1: i32, %arg2: i32) -> (i32, i32, i32, i32) {
    %c0_i32 = arith.constant 0 : i32
    %c0_i32_0 = arith.constant 0 : i32
    return %arg1, %arg0, %c0_i32, %arg2 : i32, i32, i32, i32
  }
}

</mosaic_0001>

<bundles_post_ra>
// kernel: tpu_custom_call.1
= control target key start
LH: loop header
LB: loop body
LE: loop exit
PB: predicated region body
PF: predicated region fallthrough
CT: control target
= control target key end

     0   :  { %8 = vsyncpa [#allocation3], 0  ;;  %s868_s0 = inlined_call_operand.vmem [shape: f32[2,1,8,256], index: 0, kind: input, shape index: {}]   ;;  %s869_s1 = inlined_call_operand.vmem [shape: f32[1,16,8], index: 1, kind: input, shape index: {}]   ;;  %s870_s2 = inlined_call_operand.vmem [shape: f32[1,16,1], index: 2, kind: input, shape index: {}]   ;;  %s871_s3 = inlined_call_operand.hbm [shape: f32[2,1,16,256], index: 3, kind: output, shape index: {}]  }
   0x1   :  { %10 = vsyncpa [#allocation3 + $0x1], 0  ;;  %s715_s12 = smov 0   ;;  %s717_s13 = smov 0  }
   0x2   :  { %s719_s14 = smov 0   ;;  %s721_s15 = smov 0  }
   0x3   :  { %s723_s16 = smov 0   ;;  %s725_s17 = smov 0  }
   0x4   :  { %s727_s18 = smov 0   ;;  %s729_s19 = smov 0  }
   0x5 LB: > { %s495_s20 = sadd.s32 4294967295, %s688_s19   ;;  %s496_s21 = sadd.s32 4294967294, %s688_s19   ;;  %s688_s19 = sphi %s729_s19, %s16_s19   ;;  %s684_s18 = sphi %s727_s18, %s880_s18   ;;  %s680_s17 = sphi %s725_s17, %s879_s17   ;;  %s676_s16 = sphi %s723_s16, %s878_s16   ;;  %s672_s15 = sphi %s721_s15, %s877_s15   ;;  %s668_s14 = sphi %s719_s14, %s876_s14   ;;  %s664_s13 = sphi %s717_s13, %s875_s13   ;;  %s660_s12 = sphi %s715_s12, %s874_s12  }
   0x6   : > { %s28_s22 = sadd.s32 1, %s680_s17  ;;  %s31_s23 = sadd.s32 1, %s684_s18 }
   0x7   : > { %p29_p0 = scmp.ge.s32.totalorder %s28_s22, 2  ;;  %p138_p1 = scmp.ne.s32.totalorder %s668_s14, %s664_s13 }
   0x8   : > { %p139_p2 = scmp.eq.s32.totalorder %s495_s20, 3  ;;  %p144_p5 = scmp.ne.s32.totalorder %s664_s13, %s660_s12 }
   0x9   : > { %s882_s22 = smov (%p29_p0, %s28_s22), 0  ;;  %s884_s23 = smov (!%p29_p0, %s31_s23), %s684_s18 }
   0xa   : > { %s124_s24 = ssub.s32 %s680_s17, %s882_s22  ;;  %p766_p3 = por %p139_p2, %p138_p1 }
   0xb   : > { %p33_p4 = scmp.ge.s32.totalorder %s884_s23, 2  ;;  %p145_p6 = scmp.eq.s32.totalorder %s496_s21, 3 }
   0xc   : > { %p501_p7 = scmp.ge.s32.totalorder %s688_s19, 1  ;;  %p194_p9 = scmp.lt.s32.totalorder %s688_s19, 5 }
   0xd   : > { %s886_s23 = smov (%p33_p4, %s884_s23), 0  ;;  %p775_p8 = por %p145_p6, %p144_p5 }
   0xe   : > { %s121_s27 = ssub.s32 %s684_s18, %s886_s23  ;;  %s128_s28 = sadd.s32 1, %s668_s14 }
   0xf   : > { %s125_s29 = sor.u32 %s124_s24, %s121_s27  ;;  %p195_p10 = pnand %p501_p7, %p194_p9 }
  0x10   : > { %p126_p11 = scmp.eq.s32.totalorder %s125_s29, 0  ;;  %p235_p12 = scmp.lt.s32.totalorder (!%p195_p10), %s676_s16, 1 }
  0x11   : > { %198 = sbr.rel (%p195_p10) target bundleno = 243 (0xf3), region = 32  ;;  %p239_p13 = scmp.lt.s32.totalorder (!%p195_p10), %s672_s15, 1 }
  0x12   : > { %s784_s30 = scalar_select %p126_p11, %s668_s14, %s128_s28  }
  0x13   : > { %s232_s6 = sand.u32 (!%p195_p10), 1, %s664_s13   ;;  %s508_s10 = sshll.u32 (!%p195_p10), %s676_s16, 2 }
  0x14   : > { %s502_s7 = sshll.u32 (!%p195_p10), %s232_s6, 4  ;;  %s691_s28 = smov (!%p195_p10), [#allocation2]  }
  0x16   : > { %v258_v0 = vld [vmem:[%s869_s1] sm:$0xff]  ;;  %vm272_vm0 = vcmask 64512   ;;  %v690_v1 = vmov 0   ;;  %s236_s8 = scalar_select %p235_p12, %s676_s16, 1  ;;  %v261_v3 = vld [vmem:[%s870_s2 + $0x8] sm:$0xff] }
  0x17   : > { %517 = vmatprep.mubr.msk.f32.mxu0 %vm272_vm0, %v258_v0  ;;  %595 = vset.pattern.permute.xlu0 %v690_v1  ;;  %v260_v2 = vld [vmem:[%s870_s2] sm:$0xff]  ;;  %s240_s9 = scalar_select %p239_p13, %s672_s15, 1  ;;  %v259_v5 = vld [vmem:[%s869_s1 + $0x8] sm:$0xff] }
  0x18   : > { %264 = vperm.xlu0 %595, %v260_v2   ;;  %s503_s20 = sshll.u32 %s236_s8, 1  ;;  %s370_s8 = sadd.s32 %s672_s15, %s508_s10 }
  0x19   : > { %s244_s21 = sadd.s32 %s503_s20, %s240_s9  ;;  %s234_s9 = scalar_lea.vmem [#allocation2], %s502_s7 }
  0x1a   : > { %s504_s24 = sshll.u32 %s244_s21, 3  ;;  %s373_s11 = sshll.u32 %s234_s9, 4  ;;  %s810_s11 = int_to_ptr.vmem [resolvable:$true] %s373_s11 }
  0x1b   : > { %s246_s29 = scalar_lea.vmem %s868_s0, %s504_s24  ;;  %s509_s20 = sshll.u32 %s370_s8, 7 }
  0x1c   : > { %269 = vperm.xlu0 %595, %v261_v3   ;;  %v257_v4 = vld [vmem:[%s246_s29] sm:$0xff]  ;;  %s815_s27 = scalar_lea.hbm %s871_s3, %s509_s20  ;;  %s817_s15 = scalar_lea.sflag [#allocation3], %s232_s6 }
  0x1d   : > { %515 = vmatprep.subr.mxu0 %v257_v4  ;;  %s596_s16 = scalar_lea.vmem %s810_s11, 256  ;;  %s600_s29 = sshll.u32 %s691_s28, 4  ;;  %s601_s29 = int_to_ptr.vmem [resolvable:$false] %s600_s29 }
  0x1e   : > { %516 = vmatpush3.msra.mxu0 %v257_v4  ;;  %p597_p0 = scmp.ne.s32.totalorder %s810_s11, %s596_s16  ;;  %s602_s4 = scalar_lea.vmem %s601_s29, 512 }
  0x1f   : > { %518 = vmatmul.mubr.msk.f32.vlgmr.msra.gmra.mxu0 %vm272_vm0, %v259_v5  ;;  %p603_p4 = scmp.lt.s32.totalorder %s810_s11, %s601_s29  ;;  %p604_p5 = scmp.lt.s32.totalorder %s602_s4, %s596_s16 }
  0x20   : > { %p598_p1 = pnand %p597_p0, %p766_p3 }
  0x21   : > { %p605_p6 = por %p604_p5, %p603_p4 }
  0x22   : > { %p599_p2 = pneg %p598_p1 }
  0x24   : > { %p606_p7 = pnand %p605_p6, %p599_p2 }
  0x93   : > { %v265_v6 = vpop.permute.xlu0 %264 }
  0x97   : > { %v270_v7 = vpop.permute.xlu0 %269 }
  0xdf   : > { %v519_v8 = vpop.f32.mrf.mxu0 }
  0xe0   : > { %v351_v9 = vadd.f32 %v519_v8, %v270_v7 }
  0xe1   : > { %v345_v10 = vpop.f32.mrf.mxu0 }
  0xe2   : > { %355 = vst [vmem:[%s234_s9 + $0x8] sm:$0xff] %v351_v9  ;;  %v346_v11 = vadd.f32 %v345_v10, %v265_v6 }
  0xe4   : > { %354 = vst [vmem:[%s234_s9] sm:$0xff] %v346_v11 }
  0xe5   : > { %609 = shalt.err (!%p606_p7)
}
  0xe6   : > { %s610_s5 = scalar_lea.hbm %s815_s27, 256  ;;  %s614_s10 = scalar_lea.hbm %s871_s3, 1024 }
  0xe7   : > { %p611_p9 = scmp.ne.s32.totalorder %s815_s27, %s610_s5  ;;  %p615_p12 = scmp.lt.s32.totalorder %s815_s27, %s871_s3 }
  0xe8   : > { %p616_p13 = scmp.lt.s32.totalorder %s614_s10, %s610_s5 }
  0xe9   : > { %p612_p10 = pnand %p611_p9, %p766_p3 }
  0xea   : > { %p617_p0 = por %p616_p13, %p615_p12 }
  0xeb   : > { %p613_p11 = pneg %p612_p10 }
  0xed   : > { %p618_p1 = pnand %p617_p0, %p613_p11 }
  0xef   : > { %621 = shalt.err (!%p618_p1)
}
  0xf0   : > { %s692_s20 = smov 128   ;;  %s693_s21 = smov 256  }
  0xf1   : > { %s694_s24 = smov 8  }
  0xf2   : > { %520 = dma.vmem_to_hbm [thread:$0]  (%p766_p3), %s810_s11, 256, %s815_s27, %s817_s15, %s692_s20, %s693_s21, %s694_s24  }
  0xf3 PF: > { %p526_p2 = scmp.ge.s32.totalorder %s688_s19, 2  ;;  %s388_s16 = sand.u32 1, %s660_s12  }
  0xf4   : > { %s389_s28 = scalar_lea.sflag [#allocation3], %s388_s16 }
  0xf5   : > { %p523_p4 = pnand %p526_p2, %p775_p8 }
  0xf7   : > { %p524_p5 = pneg %p523_p4 }
  0xf9   : > { %655 = dma.done.wait (%p524_p5), %s389_s28, 256  }
  0xfa   : > { %657 = vsyncadd (%p524_p5), %s389_s28, 4294967040  ;;  %s16_s19 = sadd.s32 1, %s688_s19   ;;  %s874_s12 = smov %s664_s13 }
  0xfb   : > { %p13_p6 = scmp.ge.s32.totalorder %s16_s19, 6   ;;  %s875_s13 = smov %s668_s14 }
  0xfc   : > { %s876_s14 = smov %s784_s30  ;;  %s877_s15 = smov %s680_s17 }
  0xfd   : > { %s878_s16 = smov %s684_s18  ;;  %s879_s17 = smov %s882_s22 }
  0xfe   : > { %s880_s18 = smov %s886_s23  ;;  %15 = sbr.rel (!%p13_p6) target bundleno = 5 (0x5), region = 73 }
 0x103   :  { %394 = vsyncpa [#allocation3], 1 }
 0x104   :  { %396 = vsyncpa [#allocation3 + $0x1], 1 }

</bundles_post_ra>
